<compile_context>
chip_gen: v7x
topology: tpu7x:2x2x1
jax: 0.10.0
libtpu: 0.0.40
codegen_flags: <defaults>
</compile_context>

<pallas_src>
import functools

import jax
import jax.numpy as jnp
from jax.experimental import pallas as pl
from jax.experimental.pallas import tpu as pltpu

BN_EPS = 1e-5
LANE = 128
VMEM_BUDGET = 40 * 1024 * 1024   # conservative: v7x has 64 MiB physical VMEM


def _round_up(x, m):
    return ((x + m - 1) // m) * m


def _pad2(a, rows, cols):
    return jnp.pad(a, ((0, rows - a.shape[0]), (0, cols - a.shape[1])))


def tabular_nn_kernel(
    x_ref,                 # [TB, F]   matmul dtype (e.g. bf16)
    w1_ref, b1_ref,        # [F, Hp]  folded (matmul dtype), [1, Hp] f32
    w2_ref, b2_ref,        # [Hp, Hp] folded (matmul dtype), [1, Hp] f32
    w3_ref, b3_ref,        # [Hp, Tp] f32, [1, Tp] f32
    a_ref,                 # (2,) f32 PReLU alphas in SMEM
    o_ref,                 # [TB, Tp]
):
    x = x_ref[...]

    # --- block 1: (Linear+BN folded) -> Dropout(id) -> PReLU ---
    h = jnp.dot(x, w1_ref[...], preferred_element_type=jnp.float32) + b1_ref[...]
    a1 = a_ref[0]                                   # scalar from SMEM
    h = jnp.where(h >= 0, h, a1 * h)                # PReLU, f32 elementwise

    # --- block 2: (Linear+BN folded) -> Dropout(id) -> PReLU ---
    h = jnp.dot(h.astype(w2_ref.dtype), w2_ref[...],
                preferred_element_type=jnp.float32) + b2_ref[...]
    a2 = a_ref[1]
    h = jnp.where(h >= 0, h, a2 * h)

    # --- output head: Linear (kept in f32; lane-dense Tp columns) ---
    out = jnp.dot(h, w3_ref[...], preferred_element_type=jnp.float32) + b3_ref[...]
    o_ref[...] = out.astype(o_ref.dtype)


@functools.partial(jax.jit,
                   static_argnames=("block_b", "matmul_dtype", "out_dtype"))
def tabular_nn_forward(cont_x, cate_x, params, *, block_b=1024,
                       matmul_dtype=jnp.bfloat16, out_dtype=jnp.float32):
    """Batch-tiled Pallas forward pass: BN folded, lane-dense padded H/T."""
    del cate_x  # unused by the PyTorch forward as well
    B, F = cont_x.shape
    H = params["w1"].shape[1]
    T = params["w3"].shape[1]
    Hp = _round_up(H, LANE)
    Tp = _round_up(T, LANE)

    # nn.PReLU() default is a single shared alpha; per-channel not supported.
    # TODO(synk): support per-channel PReLU ([1, Hp] alpha tile in VMEM).
    assert params["a1"].size == 1 and params["a2"].size == 1

    # ---- fold BatchNorm (running stats) into the preceding Linear, in f32 ----
    s1 = params["g1"] * jax.lax.rsqrt(params["v1"] + BN_EPS)           # [1, H]
    w1 = params["w1"] * s1
    b1 = (params["b1"] - params["m1"]) * s1 + params["be1"]
    s2 = params["g2"] * jax.lax.rsqrt(params["v2"] + BN_EPS)
    w2 = params["w2"] * s2
    b2 = (params["b2"] - params["m2"]) * s2 + params["be2"]
    w3, b3 = params["w3"], params["b3"]

    # ---- lane-dense padding of H and T (zeros propagate to zeros) ----
    w1 = _pad2(w1, F, Hp)
    b1 = _pad2(b1, 1, Hp)
    w2 = _pad2(w2, Hp, Hp)
    b2 = _pad2(b2, 1, Hp)
    w3 = _pad2(w3, Hp, Tp).astype(jnp.float32)   # output head kept in f32
    b3 = _pad2(b3, 1, Tp).astype(jnp.float32)

    # ---- MXU operands to matmul dtype (f32 accumulation keeps accuracy) ----
    x = cont_x.astype(matmul_dtype)
    w1 = w1.astype(matmul_dtype)
    w2 = w2.astype(matmul_dtype)

    # Both PReLU alphas in one (2,) f32 SMEM operand.
    alphas = jnp.concatenate([params["a1"].reshape(-1)[:1],
                              params["a2"].reshape(-1)[:1]]).astype(jnp.float32)

    # ---- batch tile selection ----
    mm_item = jnp.dtype(matmul_dtype).itemsize
    out_item = jnp.dtype(out_dtype).itemsize
    # Per-batch-row VMEM cost: double-buffered x + out tiles, plus live f32
    # intermediates (~3 x Hp columns, conservative).
    row_bytes = 2 * F * mm_item + 2 * Tp * out_item + 3 * Hp * 4
    # Resident weights/biases (x2: BlockSpec default double-buffering).
    # TODO(synk): pipeline_mode=pl.Buffered(1) on the constant-index_map
    # operands would reclaim half of this at production shapes.
    weight_bytes = 2 * (F * Hp * mm_item + Hp * Hp * mm_item
                        + Hp * Tp * 4 + (2 * Hp + Tp) * 4) + 256
    cap_rows = max(16, ((VMEM_BUDGET - weight_bytes) // max(row_bytes, 1))
                   // 16 * 16)
    two_step_rows = max(16, _round_up((B + 1) // 2, 16))  # >=2 grid steps (v7x)
    tb = min(block_b, two_step_rows, cap_rows)
    tb = max(16, (tb // 16) * 16)                          # bf16 sublane packing
    Bp = _round_up(B, tb)
    if Bp != B:
        x = jnp.pad(x, ((0, Bp - B), (0, 0)))
    grid = (Bp // tb,)

    def _resident(shape):
        # Whole array, same block every grid step -> stays in VMEM, no re-DMA.
        return pl.BlockSpec(shape, lambda i: (0,) * len(shape))

    in_specs = [
        pl.BlockSpec((tb, F), lambda i: (i, 0)),     # batch tile of x
        _resident((F, Hp)), _resident((1, Hp)),
        _resident((Hp, Hp)), _resident((1, Hp)),
        _resident((Hp, Tp)), _resident((1, Tp)),
        pl.BlockSpec(memory_space=pltpu.MemorySpace.SMEM),   # alphas
    ]
    out_specs = pl.BlockSpec((tb, Tp), lambda i: (i, 0))

    est_bytes = weight_bytes + tb * row_bytes
    vmem_limit = int(min(max(est_bytes * 2, 32 << 20), 48 << 20))

    flops = 2 * Bp * (F * Hp + Hp * Hp + Hp * Tp)
    bytes_accessed = (
        Bp * F * mm_item
        + (F * Hp + Hp * Hp) * mm_item
        + (Hp * Tp + 2 * Hp + Tp + 2) * 4
        + Bp * Tp * out_item
    )

    out = pl.pallas_call(
        tabular_nn_kernel,
        out_shape=jax.ShapeDtypeStruct((Bp, Tp), out_dtype),
        grid=grid,
        in_specs=in_specs,
        out_specs=out_specs,
        compiler_params=pltpu.CompilerParams(
            dimension_semantics=("parallel",),
            vmem_limit_bytes=vmem_limit),
        cost_estimate=pl.CostEstimate(
            flops=flops, transcendentals=0, bytes_accessed=bytes_accessed),
    )(x, w1, b1, w2, b2, w3, b3, alphas)

    return out[:B, :T]


def init_params(key, num_features, hidden_size, num_targets):
    """Deterministic parameter init matching the shapes of TabularNN.__init__."""
    ks = jax.random.split(key, 8)
    f32 = jnp.float32

    def linear(kw, kb, fan_in, fan_out):
        bound = 1.0 / jnp.sqrt(fan_in)
        w = jax.random.uniform(kw, (fan_in, fan_out), f32, -bound, bound)
        b = jax.random.uniform(kb, (1, fan_out), f32, -bound, bound)
        return w, b

    w1, b1 = linear(ks[0], ks[1], num_features, hidden_size)
    w2, b2 = linear(ks[2], ks[3], hidden_size, hidden_size)
    w3, b3 = linear(ks[4], ks[5], hidden_size, num_targets)

    # BatchNorm1d defaults: gamma=1, beta=0, running_mean=0, running_var=1.
    # Slightly perturbed (deterministic) running stats so the BN fold is real.
    m1 = 0.1 * jax.random.normal(ks[6], (1, hidden_size), f32)
    v1 = 1.0 + 0.1 * jnp.abs(jax.random.normal(ks[7], (1, hidden_size), f32))
    g1 = jnp.ones((1, hidden_size), f32)
    be1 = jnp.zeros((1, hidden_size), f32)
    m2 = jnp.zeros((1, hidden_size), f32)
    v2 = jnp.ones((1, hidden_size), f32)
    g2 = jnp.ones((1, hidden_size), f32)
    be2 = jnp.zeros((1, hidden_size), f32)

    # nn.PReLU() default: single shared alpha = 0.25.
    a1 = jnp.full((1, 1), 0.25, f32)
    a2 = jnp.full((1, 1), 0.25, f32)

    return dict(
        w1=w1, b1=b1, g1=g1, be1=be1, m1=m1, v1=v1, a1=a1,
        w2=w2, b2=b2, g2=g2, be2=be2, m2=m2, v2=v2, a2=a2,
        w3=w3, b3=b3,
    )


def reference_forward(cont_x, params):
    """Pure-JAX reference (original, unfused f32 BN) for a sanity check."""
    h = cont_x @ params["w1"] + params["b1"]
    h = params["g1"] * (h - params["m1"]) / jnp.sqrt(params["v1"] + BN_EPS) + params["be1"]
    h = jnp.where(h >= 0, h, params["a1"][0, 0] * h)
    h = h @ params["w2"] + params["b2"]
    h = params["g2"] * (h - params["m2"]) / jnp.sqrt(params["v2"] + BN_EPS) + params["be2"]
    h = jnp.where(h >= 0, h, params["a2"][0, 0] * h)
    return h @ params["w3"] + params["b3"]


if __name__ == "__main__":
    # Small, module-consistent shapes: num_features=32, hidden=64, targets=16.
    F, H, T = 32, 64, 16
    key = jax.random.PRNGKey(0)
    k_x, k_cat, k_p = jax.random.split(key, 3)
    params = init_params(k_p, F, H, T)

    # Case 1: B=64 -> 2-step batch grid (v7x both cores), f32 matmul path.
    B = 64
    cont_x = jax.random.normal(k_x, (B, F), jnp.float32)
    cate_x = jax.random.randint(k_cat, (B, 2), 0, 3)  # ['cp_time','cp_dose'] unused
    ref = reference_forward(cont_x, params)

    out_f32 = tabular_nn_forward(cont_x, cate_x, params,
                                 matmul_dtype=jnp.float32)
    out_f32 = jax.block_until_ready(out_f32)
    assert out_f32.shape == (B, T)
    assert jnp.allclose(out_f32, ref, atol=2e-4, rtol=2e-4)

    # Case 2: B=37 exercises batch-tile padding; bf16 MXU path (default).
    B2 = 37
    cont_x2 = cont_x[:B2]
    cate_x2 = cate_x[:B2]
    ref2 = reference_forward(cont_x2, params)
    out_bf16 = tabular_nn_forward(cont_x2, cate_x2, params)
    out_bf16 = jax.block_until_ready(out_bf16)
    assert out_bf16.shape == (B2, T)
    assert jnp.allclose(out_bf16, ref2, atol=5e-2, rtol=5e-2)

    print("KERNEL_OK")
</pallas_src>

<mosaic_0001>
module attributes {stable_mosaic.version = 11 : i64} {
  func.func @tabular_nn_kernel(%arg0: i32, %arg1: memref<32x32xf32, #tpu.memory_space<vmem>>, %arg2: memref<32x128xf32, #tpu.memory_space<vmem>>, %arg3: memref<1x128xf32, #tpu.memory_space<vmem>>, %arg4: memref<128x128xf32, #tpu.memory_space<vmem>>, %arg5: memref<1x128xf32, #tpu.memory_space<vmem>>, %arg6: memref<128x128xf32, #tpu.memory_space<vmem>>, %arg7: memref<1x128xf32, #tpu.memory_space<vmem>>, %arg8: memref<2xf32, #tpu.memory_space<smem>>, %arg9: memref<32x128xf32, #tpu.memory_space<vmem>>) attributes {dimension_semantics = [#tpu.dimension_semantics<parallel>], iteration_bounds = array<i64: 2>, scalar_prefetch = 0 : i64, scratch_operands = 0 : i64, tpu.core_type = #tpu.core_type<tc>, window_params = [{transform_indices = @transform_0, window_bounds = array<i64: 32, 32>}, {pipeline_mode = #tpu.pipeline_mode<synchronous>, transform_indices = @transform_1, window_bounds = array<i64: 32, 128>}, {pipeline_mode = #tpu.pipeline_mode<synchronous>, transform_indices = @transform_2, window_bounds = array<i64: 1, 128>}, {pipeline_mode = #tpu.pipeline_mode<synchronous>, transform_indices = @transform_3, window_bounds = array<i64: 128, 128>}, {pipeline_mode = #tpu.pipeline_mode<synchronous>, transform_indices = @transform_4, window_bounds = array<i64: 1, 128>}, {pipeline_mode = #tpu.pipeline_mode<synchronous>, transform_indices = @transform_5, window_bounds = array<i64: 128, 128>}, {pipeline_mode = #tpu.pipeline_mode<synchronous>, transform_indices = @transform_6, window_bounds = array<i64: 1, 128>}, {transform_indices = @transform_7, window_bounds = array<i64: 2>}, {transform_indices = @transform_8, window_bounds = array<i64: 32, 128>}]} {
    %c0 = arith.constant 0 : index
    %c0_0 = arith.constant 0 : index
    %0 = vector.load %arg1[%c0, %c0_0] : memref<32x32xf32, #tpu.memory_space<vmem>>, vector<32x32xf32>
    %c0_1 = arith.constant 0 : index
    %c0_2 = arith.constant 0 : index
    %1 = vector.load %arg2[%c0_1, %c0_2] : memref<32x128xf32, #tpu.memory_space<vmem>>, vector<32x128xf32>
    %cst = arith.constant dense<0.000000e+00> : vector<32x128xf32>
    %2 = tpu.matmul %0, %1, %cst {dimension_numbers = #tpu.dot_dimension_numbers<[1], [0], [0], [1], [0, 0, 1, 1], [], []>} : vector<32x32xf32>, vector<32x128xf32>, vector<32x128xf32> -> vector<32x128xf32>
    %c0_3 = arith.constant 0 : index
    %c0_4 = arith.constant 0 : index
    %3 = vector.load %arg3[%c0_3, %c0_4] : memref<1x128xf32, #tpu.memory_space<vmem>>, vector<1x128xf32>
    %4 = vector.broadcast %3 : vector<1x128xf32> to vector<32x128xf32>
    %5 = arith.addf %2, %4 : vector<32x128xf32>
    %c0_5 = arith.constant 0 : index
    %6 = memref.load %arg8[%c0_5] : memref<2xf32, #tpu.memory_space<smem>>
    %cst_6 = arith.constant 0.000000e+00 : f32
    %7 = vector.broadcast %cst_6 : f32 to vector<32x128xf32>
    %8 = arith.cmpf oge, %5, %7 : vector<32x128xf32>
    %9 = vector.broadcast %6 : f32 to vector<32x128xf32>
    %10 = arith.mulf %9, %5 : vector<32x128xf32>
    %11 = arith.select %8, %5, %10 : vector<32x128xi1>, vector<32x128xf32>
    %c0_7 = arith.constant 0 : index
    %c0_8 = arith.constant 0 : index
    %12 = vector.load %arg4[%c0_7, %c0_8] : memref<128x128xf32, #tpu.memory_space<vmem>>, vector<128x128xf32>
    %cst_9 = arith.constant dense<0.000000e+00> : vector<32x128xf32>
    %13 = tpu.matmul %11, %12, %cst_9 {dimension_numbers = #tpu.dot_dimension_numbers<[1], [0], [0], [1], [0, 0, 1, 1], [], []>} : vector<32x128xf32>, vector<128x128xf32>, vector<32x128xf32> -> vector<32x128xf32>
    %c0_10 = arith.constant 0 : index
    %c0_11 = arith.constant 0 : index
    %14 = vector.load %arg5[%c0_10, %c0_11] : memref<1x128xf32, #tpu.memory_space<vmem>>, vector<1x128xf32>
    %15 = vector.broadcast %14 : vector<1x128xf32> to vector<32x128xf32>
    %16 = arith.addf %13, %15 : vector<32x128xf32>
    %c1 = arith.constant 1 : index
    %17 = memref.load %arg8[%c1] : memref<2xf32, #tpu.memory_space<smem>>
    %cst_12 = arith.constant 0.000000e+00 : f32
    %18 = vector.broadcast %cst_12 : f32 to vector<32x128xf32>
    %19 = arith.cmpf oge, %16, %18 : vector<32x128xf32>
    %20 = vector.broadcast %17 : f32 to vector<32x128xf32>
    %21 = arith.mulf %20, %16 : vector<32x128xf32>
    %22 = arith.select %19, %16, %21 : vector<32x128xi1>, vector<32x128xf32>
    %c0_13 = arith.constant 0 : index
    %c0_14 = arith.constant 0 : index
    %23 = vector.load %arg6[%c0_13, %c0_14] : memref<128x128xf32, #tpu.memory_space<vmem>>, vector<128x128xf32>
    %cst_15 = arith.constant dense<0.000000e+00> : vector<32x128xf32>
    %24 = tpu.matmul %22, %23, %cst_15 {dimension_numbers = #tpu.dot_dimension_numbers<[1], [0], [0], [1], [0, 0, 1, 1], [], []>} : vector<32x128xf32>, vector<128x128xf32>, vector<32x128xf32> -> vector<32x128xf32>
    %c0_16 = arith.constant 0 : index
    %c0_17 = arith.constant 0 : index
    %25 = vector.load %arg7[%c0_16, %c0_17] : memref<1x128xf32, #tpu.memory_space<vmem>>, vector<1x128xf32>
    %26 = vector.broadcast %25 : vector<1x128xf32> to vector<32x128xf32>
    %27 = arith.addf %24, %26 : vector<32x128xf32>
    %c0_18 = arith.constant 0 : index
    %c0_19 = arith.constant 0 : index
    %28 = vector.load %arg9[%c0_18, %c0_19] : memref<32x128xf32, #tpu.memory_space<vmem>>, vector<32x128xf32>
    tpu.vector_store %arg9[%c0_18, %c0_19], %27 {strides = array<i32>} : memref<32x128xf32, #tpu.memory_space<vmem>>, vector<32x128xf32>,
    return
  }
  func.func @transform_0(%arg0: i32) -> (i32, i32) {
    %c0_i32 = arith.constant 0 : i32
    %c0_i32_0 = arith.constant 0 : i32
    return %arg0, %c0_i32 : i32, i32
  }
  func.func @transform_1(%arg0: i32) -> (i32, i32) {
    %c0_i32 = arith.constant 0 : i32
    %c0_i32_0 = arith.constant 0 : i32
    %c0_i32_1 = arith.constant 0 : i32
    return %c0_i32, %c0_i32_0 : i32, i32
  }
  func.func @transform_2(%arg0: i32) -> (i32, i32) {
    %c0_i32 = arith.constant 0 : i32
    %c0_i32_0 = arith.constant 0 : i32
    %c0_i32_1 = arith.constant 0 : i32
    return %c0_i32, %c0_i32_0 : i32, i32
  }
  func.func @transform_3(%arg0: i32) -> (i32, i32) {
    %c0_i32 = arith.constant 0 : i32
    %c0_i32_0 = arith.constant 0 : i32
    %c0_i32_1 = arith.constant 0 : i32
    return %c0_i32, %c0_i32_0 : i32, i32
  }
  func.func @transform_4(%arg0: i32) -> (i32, i32) {
    %c0_i32 = arith.constant 0 : i32
    %c0_i32_0 = arith.constant 0 : i32
    %c0_i32_1 = arith.constant 0 : i32
    return %c0_i32, %c0_i32_0 : i32, i32
  }
  func.func @transform_5(%arg0: i32) -> (i32, i32) {
    %c0_i32 = arith.constant 0 : i32
    %c0_i32_0 = arith.constant 0 : i32
    %c0_i32_1 = arith.constant 0 : i32
    return %c0_i32, %c0_i32_0 : i32, i32
  }
  func.func @transform_6(%arg0: i32) -> (i32, i32) {
    %c0_i32 = arith.constant 0 : i32
    %c0_i32_0 = arith.constant 0 : i32
    %c0_i32_1 = arith.constant 0 : i32
    return %c0_i32, %c0_i32_0 : i32, i32
  }
  func.func @transform_7(%arg0: i32) -> i32 {
    %c0_i32 = arith.constant 0 : i32
    %c0_i32_0 = arith.constant 0 : i32
    return %c0_i32 : i32
  }
  func.func @transform_8(%arg0: i32) -> (i32, i32) {
    %c0_i32 = arith.constant 0 : i32
    %c0_i32_0 = arith.constant 0 : i32
    return %arg0, %c0_i32 : i32, i32
  }
}

</mosaic_0001>

<bundles_post_ra>
// kernel: tabular_nn_forward.1
= control target key start
LH: loop header
LB: loop body
LE: loop exit
PB: predicated region body
PF: predicated region fallthrough
CT: control target
= control target key end

     0   :  { %13 = vsyncpa [#allocation3], 0  ;;  %s1075_s27 = smov 0   ;;  %s1241_s0 = inlined_call_operand.vmem [shape: f32[64,32], index: 0, kind: input, shape index: {}]   ;;  %s1242_s1 = inlined_call_operand.vmem [shape: f32[32,128], index: 1, kind: input, shape index: {}]   ;;  %s1243_s2 = inlined_call_operand.vmem [shape: f32[1,128], index: 2, kind: input, shape index: {}]   ;;  %s1244_s3 = inlined_call_operand.vmem [shape: f32[128,128], index: 3, kind: input, shape index: {}]   ;;  %s1245_s4 = inlined_call_operand.vmem [shape: f32[1,128], index: 4, kind: input, shape index: {}]   ;;  %s1246_s5 = inlined_call_operand.vmem [shape: f32[128,128], index: 5, kind: input, shape index: {}]   ;;  %s1247_s6 = inlined_call_operand.vmem [shape: f32[1,128], index: 6, kind: input, shape index: {}]   ;;  %s1248_s7 = inlined_call_operand.vmem [shape: f32[2], index: 7, kind: input, shape index: {}]   ;;  %s1249_s8 = inlined_call_operand.vmem [shape: f32[64,128], index: 8, kind: output, shape index: {}]  }
   0x1 LB: > { %s752_s28 = sadd.s32 4294967295, %s1027_s27   ;;  %p754_p0 = scmp.ge.s32.totalorder %s1027_s27, 1  ;;  %s1027_s27 = sphi %s1075_s27, %s19_s27  }
   0x2   : > { %p223_p1 = scmp.lt.s32.totalorder %s1027_s27, 3  ;;  %s254_s9 = sshll.u32 %s1248_s7, 4  ;;  %s255_s9 = int_to_ptr.vmem [resolvable:$true] %s254_s9 }
   0x3   : > { %p1090_p3 = scmp.eq.s32.totalorder %s752_s28, 0  ;;  %s1002_s12 = scalar_lea.vmem %s255_s9, 16 }
   0x4   : > { %p1086_p2 = pnand %p754_p0, %p223_p1  ;;  %p1003_p6 = scmp.ne.s32.totalorder %s255_s9, %s1002_s12 }
   0x5   : > { %p1010_p10 = scmp.lt.s32.totalorder %s255_s9, %s255_s9  ;;  %p1011_p11 = scmp.lt.s32.totalorder %s1002_s12, %s1002_s12 }
   0x6   : > { %p987_p4 = pneg %p1086_p2 }
   0x7   : > { %p1012_p12 = por %p1011_p11, %p1010_p10 }
   0x8   : > { %p988_p5 = pnand %p1090_p3, %p987_p4 }
   0xa   : > { %p1004_p7 = pneg %p988_p5 }
   0xc   : > { %p1005_p8 = pnand %p1004_p7, %p1003_p6 }
   0xe   : > { %p1006_p9 = pneg %p1005_p8 }
  0x10   : > { %p1013_p13 = pnand %p1012_p12, %p1006_p9 }
  0x12   : > { %1016 = shalt.err (!%p1013_p13)
}
  0x13   : > { %s1029_s13 = smov [#allocation2]   ;;  %276 = sbr.rel (%p1086_p2) target bundleno = 698 (0x2ba), region = 52 }
  0x14   : > { %990 = dma.vmem_to_smem (!%p988_p5), %s255_s9, 16, %s1029_s13, [#allocation3]  }
  0x1a   : > { %1022 = dma.done.wait (%p1090_p3), [#allocation3], 16  }
  0x1b   : > { %1024 = vsyncadd (%p1090_p3), [#allocation3], 4294967280 }
  0x1c   : > { %282 = sfence }
  0x1d   : > { %v327_v0 = vld [vmem:[%s1242_s1] sm:$0xff]  ;;  %v328_v1 = vld [vmem:[%s1242_s1 + $0x8] sm:$0xff]  ;;  %v329_v2 = vld [vmem:[%s1242_s1 + $0x10] sm:$0xff]  ;;  %s759_s20 = sshll.u32 %s752_s28, 2  ;;  %vm338_vm0 = vcmask 261120   ;;  %s436_s25 = sld [smem:[#allocation2]] }
  0x1e   : > { %v911_v3 = vpack.c.bf16 %v328_v1, %v327_v0  ;;  %v330_v4 = vld [vmem:[%s1242_s1 + $0x18] sm:$0xff]  ;;  %p312_p0 = scmp.lt.s32.totalorder %s759_s20, 7  ;;  %v450_v5 = vld [vmem:[%s1244_s3] sm:$0xff]  ;;  %v451_v6 = vld [vmem:[%s1244_s3 + $0x8] sm:$0xff]  ;;  %s769_s16 = sld [smem:[#allocation2 + $0x1]] }
  0x1f   : > { %v915_v7 = vpack.c.bf16 %v330_v4, %v329_v2  ;;  %v919_v8 = vpack.c.bf16 %v451_v6, %v450_v5  ;;  %v452_v9 = vld [vmem:[%s1244_s3 + $0x10] sm:$0xff]  ;;  %v453_v10 = vld [vmem:[%s1244_s3 + $0x18] sm:$0xff]  ;;  %v454_v12 = vld [vmem:[%s1244_s3 + $0x20] sm:$0xff] }
  0x20   : > { %912 = vmatprep.subr.bf16.mxu0 %v911_v3  ;;  %s1253_s20 = smov (!%p312_p0, %s759_s20), 7  ;;  %v923_v11 = vpack.c.bf16 %v453_v10, %v452_v9  ;;  %v455_v13 = vld [vmem:[%s1244_s3 + $0x28] sm:$0xff]  ;;  %v456_v16 = vld [vmem:[%s1244_s3 + $0x30] sm:$0xff]  ;;  %v457_v17 = vld [vmem:[%s1244_s3 + $0x38] sm:$0xff] }
  0x21   : > { %914 = vmatpush3.bf16.msra.mxu0 %v911_v3  ;;  %920 = vmatprep.subr.bf16.mxu1 %v919_v8  ;;  %s760_s14 = sshll.u32 %s1253_s20, 3  ;;  %v927_v14 = vpack.c.bf16 %v455_v13, %v454_v12  ;;  %v931_v20 = vpack.c.bf16 %v457_v17, %v456_v16  ;;  %v458_v21 = vld [vmem:[%s1244_s3 + $0x40] sm:$0xff]  ;;  %v459_v22 = vld [vmem:[%s1244_s3 + $0x48] sm:$0xff]  ;;  %v460_v25 = vld [vmem:[%s1244_s3 + $0x50] sm:$0xff] }
  0x22   : > { %916 = vmatprep.subr.bf16.mxu0 %v915_v7  ;;  %922 = vmatpush3.bf16.msra.mxu1 %v919_v8  ;;  %s315_s17 = scalar_lea.vmem %s1241_s0, %s760_s14  ;;  %v935_v24 = vpack.c.bf16 %v459_v22, %v458_v21  ;;  %v461_v26 = vld [vmem:[%s1244_s3 + $0x58] sm:$0xff]  ;;  %v462_v28 = vld [vmem:[%s1244_s3 + $0x60] sm:$0xff]  ;;  %v463_v29 = vld [vmem:[%s1244_s3 + $0x68] sm:$0xff]  ;;  %s321_s24 = scalar_lea.vmem %s1249_s8, %s760_s14 }
  0x23   : > { %924 = vmatprep.subr.bf16.mxu1 %v923_v11  ;;  %v323_v15 = vld [vmem:[%s315_s17] sm:$0xff]  ;;  %v324_v18 = vld [vmem:[%s315_s17 + $0x8] sm:$0xff]  ;;  %v325_v19 = vld [vmem:[%s315_s17 + $0x10] sm:$0xff]  ;;  %v939_v27 = vpack.c.bf16 %v461_v26, %v460_v25  ;;  %v943_v30 = vpack.c.bf16 %v463_v29, %v462_v28  ;;  %v441_v54 = vstv %s436_s25 }
  0x24   : > { %829 = vmatprep.mubr.msk.f32.mxu0 %vm338_vm0, %v323_v15  ;;  %v326_v23 = vld [vmem:[%s315_s17 + $0x18] sm:$0xff]  ;;  %v464_v31 = vld [vmem:[%s1244_s3 + $0x70] sm:$0xff]  ;;  %v572_v34 = vld [vmem:[%s1246_s5] sm:$0xff] }
  0x25   : > { %918 = vmatpush3.bf16.msra.mxu0 %v915_v7  ;;  %v465_v32 = vld [vmem:[%s1244_s3 + $0x78] sm:$0xff]  ;;  %v573_v35 = vld [vmem:[%s1246_s5 + $0x8] sm:$0xff]  ;;  %v574_v36 = vld [vmem:[%s1246_s5 + $0x10] sm:$0xff] }
  0x26   : > { %926 = vmatpush3.bf16.msra.mxu1 %v923_v11  ;;  %v947_v33 = vpack.c.bf16 %v465_v32, %v464_v31  ;;  %v951_v37 = vpack.c.bf16 %v573_v35, %v572_v34  ;;  %v575_v38 = vld [vmem:[%s1246_s5 + $0x18] sm:$0xff]  ;;  %v576_v40 = vld [vmem:[%s1246_s5 + $0x20] sm:$0xff]  ;;  %v577_v41 = vld [vmem:[%s1246_s5 + $0x28] sm:$0xff] }
  0x27   : > { %928 = vmatprep.subr.bf16.mxu1 %v927_v14  ;;  %v955_v39 = vpack.c.bf16 %v575_v38, %v574_v36  ;;  %v959_v42 = vpack.c.bf16 %v577_v41, %v576_v40  ;;  %v578_v43 = vld [vmem:[%s1246_s5 + $0x30] sm:$0xff]  ;;  %v579_v44 = vld [vmem:[%s1246_s5 + $0x38] sm:$0xff]  ;;  %v580_v46 = vld [vmem:[%s1246_s5 + $0x40] sm:$0xff] }
  0x28   : > { %830 = vmatmul.mubr.msk.f32.vlgmr.msra.gmra.mrb[0].mxu0 %vm338_vm0, %v324_v18  ;;  %952 = vmatprep.subr.bf16.mxu0 %v951_v37  ;;  %v963_v45 = vpack.c.bf16 %v579_v44, %v578_v43  ;;  %v581_v47 = vld [vmem:[%s1246_s5 + $0x48] sm:$0xff]  ;;  %v582_v49 = vld [vmem:[%s1246_s5 + $0x50] sm:$0xff]  ;;  %v583_v50 = vld [vmem:[%s1246_s5 + $0x58] sm:$0xff] }
  0x29   : > { %832 = vmatprep.mubr.msk.f32.mxu0 %vm338_vm0, %v325_v19  ;;  %954 = vmatpush3.bf16.msra.mxu0 %v951_v37  ;;  %v967_v48 = vpack.c.bf16 %v581_v47, %v580_v46  ;;  %v971_v51 = vpack.c.bf16 %v583_v50, %v582_v49  ;;  %v763_v52 = vld [vmem:[%s1243_s2] ss:$0 sm:$0xff]  ;;  %v585_v7 = vld [vmem:[%s1246_s5 + $0x68] sm:$0xff]  ;;  %v586_v9 = vld [vmem:[%s1246_s5 + $0x70] sm:$0xff] }
  0x2a   : > { %930 = vmatpush3.bf16.msra.mxu1 %v927_v14  ;;  %956 = vmatprep.subr.bf16.mxu0 %v955_v39  ;;  %v584_v6 = vld [vmem:[%s1246_s5 + $0x60] sm:$0xff]  ;;  %v587_v10 = vld [vmem:[%s1246_s5 + $0x78] sm:$0xff]  ;;  %v563_v14 = vstv %s769_s16 }
  0x2b   : > { %932 = vmatprep.subr.bf16.mxu1 %v931_v20  ;;  %v975_v8 = vpack.c.bf16 %v585_v7, %v584_v6  ;;  %v979_v11 = vpack.c.bf16 %v587_v10, %v586_v9  ;;  %v768_v12 = vld [vmem:[%s1245_s4] ss:$0 sm:$0xff] }
  0x2c   : > { %833 = vmatmul.mubr.msk.f32.gmra.mrb[2].mxu0 %vm338_vm0, %v326_v23 }
  0x2d   : > { %958 = vmatpush3.bf16.msra.mxu0 %v955_v39 }
  0x2e   : > { %934 = vmatpush3.bf16.msra.mxu1 %v931_v20  ;;  %960 = vmatprep.subr.bf16.mxu0 %v959_v42 }
  0x2f   : > { %936 = vmatprep.subr.bf16.mxu1 %v935_v24 }
  0x31   : > { %962 = vmatpush3.bf16.msra.mxu0 %v959_v42 }
  0x32   : > { %938 = vmatpush3.bf16.msra.mxu1 %v935_v24  ;;  %964 = vmatprep.subr.bf16.mxu0 %v963_v45 }
  0x33   : > { %940 = vmatprep.subr.bf16.mxu1 %v939_v27 }
  0x35   : > { %966 = vmatpush3.bf16.msra.mxu0 %v963_v45 }
  0x36   : > { %942 = vmatpush3.bf16.msra.mxu1 %v939_v27  ;;  %968 = vmatprep.subr.bf16.mxu0 %v967_v48 }
  0x37   : > { %944 = vmatprep.subr.bf16.mxu1 %v943_v30 }
  0x39   : > { %970 = vmatpush3.bf16.msra.mxu0 %v967_v48 }
  0x3a   : > { %946 = vmatpush3.bf16.msra.mxu1 %v943_v30  ;;  %972 = vmatprep.subr.bf16.mxu0 %v971_v51  ;;  %v770_v30 = vld [vmem:[%s1247_s6] ss:$0 sm:$0xff] }
  0x3b   : > { %948 = vmatprep.subr.bf16.mxu1 %v947_v33 }
  0x3d   : > { %974 = vmatpush3.bf16.msra.mxu0 %v971_v51 }
  0x3e   : > { %950 = vmatpush3.bf16.msra.mxu1 %v947_v33  ;;  %976 = vmatprep.subr.bf16.mxu0 %v975_v8 }
  0x41   : > { %978 = vmatpush3.bf16.msra.mxu0 %v975_v8 }
  0x42   : > { %980 = vmatprep.subr.bf16.mxu0 %v979_v11 }
  0x45   : > { %982 = vmatpush3.bf16.msra.mxu0 %v979_v11 }
  0xfb   : > { %v831_v53 = vpop.f32.mrb[0].mxu0 }
  0xfc   : > { %v423_v55 = vadd.f32 %v831_v53, %v763_v52  ;;  %v417_v56 = vpop.f32.mrb[1].mxu0 }
  0xfd   : > { %v418_v57 = vadd.f32 %v763_v52, %v417_v56 }
  0xfe   : > { %v443_v58 = vmul.f32 %v441_v54, %v423_v55  ;;  %vm438_vm2 = vcmp.ge.f32.partialorder %v423_v55, 0.0 }
  0xff   : > { %v834_v59 = vpop.f32.mrb[2].mxu0  ;;  %vm437_vm1 = vcmp.ge.f32.partialorder %v418_v57, 0.0  ;;  %v442_v60 = vmul.f32 %v441_v54, %v418_v57 }
 0x100   : > { %v433_v61 = vadd.f32 %v834_v59, %v763_v52  ;;  %v427_v62 = vpop.f32.mrb[3].mxu0  ;;  %v447_v2 = vsel %vm438_vm2, %v423_v55, %v443_v58 }
 0x101   : > { %v428_v63 = vadd.f32 %v763_v52, %v427_v62  ;;  %v446_v0 = vsel %vm437_vm1, %v418_v57, %v442_v60 }
 0x102   : > { %v445_v1 = vmul.f32 %v441_v54, %v433_v61  ;;  %867 = vmatprep.mubr.f32.mxu1 %v446_v0  ;;  %vm440_vm4 = vcmp.ge.f32.partialorder %v433_v61, 0.0 }
 0x103   : > { %v444_v3 = vmul.f32 %v441_v54, %v428_v63  ;;  %868 = vmatmul.mubr.f32.vlgmr.msra.gmra.mrb[0].mxu1 %v447_v2  ;;  %vm439_vm3 = vcmp.ge.f32.partialorder %v428_v63, 0.0 }
 0x104   : > { %v449_v5 = vsel %vm440_vm4, %v433_v61, %v445_v1 }
 0x105   : > { %v448_v4 = vsel %vm439_vm3, %v428_v63, %v444_v3 }
 0x106   : > { %870 = vmatprep.mubr.f32.mxu1 %v448_v4 }
 0x107   : > { %871 = vmatmul.mubr.f32.gmra.mrb[2].mxu1 %v449_v5 }
 0x1d6   : > { %v869_v13 = vpop.f32.mrb[0].mxu1 }
 0x1d7   : > { %v545_v15 = vadd.f32 %v869_v13, %v768_v12  ;;  %v539_v16 = vpop.f32.mrb[1].mxu1 }
 0x1d8   : > { %v540_v17 = vadd.f32 %v768_v12, %v539_v16 }
 0x1d9   : > { %v565_v18 = vmul.f32 %v563_v14, %v545_v15  ;;  %vm560_vm5 = vcmp.ge.f32.partialorder %v545_v15, 0.0 }
 0x1da   : > { %v564_v19 = vmul.f32 %v563_v14, %v540_v17  ;;  %v872_v20 = vpop.f32.mrb[2].mxu1  ;;  %vm559_vm6 = vcmp.ge.f32.partialorder %v540_v17, 0.0 }
 0x1db   : > { %v555_v21 = vadd.f32 %v872_v20, %v768_v12  ;;  %v549_v22 = vpop.f32.mrb[3].mxu1  ;;  %v569_v25 = vsel %vm560_vm5, %v545_v15, %v565_v18 }
 0x1dc   : > { %v550_v23 = vadd.f32 %v768_v12, %v549_v22  ;;  %v568_v24 = vsel %vm559_vm6, %v540_v17, %v564_v19 }
 0x1dd   : > { %v567_v26 = vmul.f32 %v563_v14, %v555_v21  ;;  %905 = vmatprep.mubr.f32.mxu0 %v568_v24  ;;  %vm562_vm8 = vcmp.ge.f32.partialorder %v555_v21, 0.0 }
 0x1de   : > { %v566_v27 = vmul.f32 %v563_v14, %v550_v23  ;;  %906 = vmatmul.mubr.f32.vlgmr.msra.gmra.mrb[4].mxu0 %v569_v25  ;;  %vm561_vm7 = vcmp.ge.f32.partialorder %v550_v23, 0.0 }
 0x1df   : > { %v571_v29 = vsel %vm562_vm8, %v555_v21, %v567_v26 }
 0x1e0   : > { %v570_v28 = vsel %vm561_vm7, %v550_v23, %v566_v27 }
 0x1e1   : > { %908 = vmatprep.mubr.f32.mxu0 %v570_v28 }
 0x1e2   : > { %909 = vmatmul.mubr.f32.gmra.mrb[6].mxu0 %v571_v29 }
 0x2b1   : > { %v907_v31 = vpop.f32.mrb[4].mxu0 }
 0x2b2   : > { %v661_v32 = vpop.f32.mrb[5].mxu0  ;;  %v667_v34 = vadd.f32 %v907_v31, %v770_v30 }
 0x2b3   : > { %v662_v33 = vadd.f32 %v770_v30, %v661_v32 }
 0x2b4   : > { %681 = vst [vmem:[%s321_s24 + $0x8] sm:$0xff] %v667_v34 }
 0x2b5   : > { %680 = vst [vmem:[%s321_s24] sm:$0xff] %v662_v33  ;;  %v910_v35 = vpop.f32.mrb[6].mxu0 }
 0x2b6   : > { %v671_v36 = vpop.f32.mrb[7].mxu0  ;;  %v677_v38 = vadd.f32 %v910_v35, %v770_v30 }
 0x2b7   : > { %v672_v37 = vadd.f32 %v770_v30, %v671_v36 }
 0x2b8   : > { %683 = vst [vmem:[%s321_s24 + $0x18] sm:$0xff] %v677_v38 }
 0x2b9   : > { %682 = vst [vmem:[%s321_s24 + $0x10] sm:$0xff] %v672_v37 }
 0x2ba PF: > { %s19_s27 = sadd.s32 1, %s1027_s27  }
 0x2bb   : > { %p16_p1 = scmp.ge.s32.totalorder %s19_s27, 4  }
 0x2bd   :  { %18 = sbr.rel (!%p16_p1) target bundleno = 1 (0x1), region = 87 }
 0x2c4   :  { %706 = vsyncpa [#allocation3], 1 }
 0x2c5   :  { %708 = vsyncpa [#allocation3 + $0x1], 1 }

</bundles_post_ra>
